<compile_context>
chip_gen: v6e
topology: v6e:2x2x1
jax: 0.10.0
libtpu: 0.0.40
codegen_flags: <defaults>
</compile_context>

<pallas_src>
import jax
import jax.numpy as jnp
from jax.experimental import pallas as pl
from jax.experimental.pallas import tpu as pltpu


def _round_up(x, m):
    return ((x + m - 1) // m) * m


def _cdiv(a, b):
    return -(-a // b)


def _vmem_capacity_bytes():
    """Physical VMEM of the current generation; conservative (v7x) fallback."""
    cap = None
    try:
        cap = int(pltpu.get_tpu_info().vmem_capacity_bytes)
    except Exception:
        cap = None
    if not cap or cap <= 0:
        cap = 64 << 20
    return cap


def _linear_kernel(x_ref, w_ref, o_ref):
    # x_ref: (tm, K) activations; w_ref: (K, tn) pre-transposed weight slab.
    # Pure NN MXU matmul with f32 accumulation.
    o_ref[...] = jnp.dot(
        x_ref[...], w_ref[...], preferred_element_type=jnp.float32
    ).astype(o_ref.dtype)


def _make_linear_kernel_kt(k_axis):
    # Variant with a K (in_dim) reduction grid axis and an f32 accumulator.
    def kernel(x_ref, w_ref, o_ref, acc_ref):
        @pl.when(pl.program_id(k_axis) == 0)
        def _():
            acc_ref[...] = jnp.zeros_like(acc_ref)

        acc_ref[...] += jnp.dot(
            x_ref[...], w_ref[...], preferred_element_type=jnp.float32
        )

        @pl.when(pl.program_id(k_axis) == pl.num_programs(k_axis) - 1)
        def _():
            o_ref[...] = acc_ref[...].astype(o_ref.dtype)

    return kernel


def _num_fetches(order, sizes, dep_axes):
    """Times a tile whose block index depends on `dep_axes` is (re)fetched
    under lexicographic iteration of the grid axes in `order`."""
    present = [order.index(a) for a in dep_axes if a in order]
    if not present:
        return 1
    innermost = max(present)
    n = 1
    for a in order[: innermost + 1]:
        n *= sizes[a]
    return n


def continuous_embedding(inputs, weight):
    """inputs: [..., in_dim]; weight: [out_dim, in_dim] (PyTorch Linear layout).

    Returns [..., out_dim] = inputs @ weight.T (no bias), in inputs.dtype.
    """
    in_dim = inputs.shape[-1]
    out_dim, w_in = weight.shape
    assert w_in == in_dim, (weight.shape, in_dim)
    lead_shape = inputs.shape[:-1]
    out_dtype = inputs.dtype
    itemsize = jnp.dtype(out_dtype).itemsize
    sub = {4: 8, 2: 16, 1: 32}.get(itemsize, 8)  # dtype-aware sublane multiple

    x2d = inputs.reshape(-1, in_dim)
    M = x2d.shape[0]

    # ---- per-generation VMEM budget --------------------------------------
    cap = _vmem_capacity_bytes()
    tile_budget = int(cap * 0.60)   # double-buffered tile working set budget
    limit_cap = int(cap * 0.90)     # hard cap handed to Mosaic (< physical)

    # ---- K (in_dim) tiling: keep full in_dim unless it is large ----------
    if in_dim <= 2048:
        tk, num_k = in_dim, 1
    else:
        num_k = _cdiv(in_dim, 2048)
        tk = _round_up(_cdiv(in_dim, num_k), 128)
        num_k = _cdiv(in_dim, tk)
    k_pad = tk * num_k

    # ---- N (out_dim): collapse to a single lane-dense block if it fits ---
    n_full = _round_up(out_dim, 128)
    w_dbl_full = 2 * tk * n_full * itemsize        # weight tile, double-buffered
    if w_dbl_full <= tile_budget // 2:
        tn = n_full
    else:
        tn_rows = max(128, (tile_budget * 2 // 5) // (2 * tk * itemsize))
        tn = (tn_rows // 256) * 256 if tn_rows >= 256 else 128
        tn = min(tn, n_full)
    n_pad = _round_up(out_dim, tn)
    num_n = n_pad // tn

    # ---- M (rows): as large as the remaining budget allows ---------------
    w_tile_bytes = 2 * tk * tn * itemsize
    per_row = 2 * tk * itemsize + 2 * tn * itemsize + (4 * tn if num_k > 1 else 0)
    tm_cap = max(sub, (tile_budget - w_tile_bytes) // per_row)
    tm_cap = min(2048, tm_cap)
    if _round_up(M, sub) <= tm_cap:
        tm = _round_up(M, sub)
    elif tm_cap >= 256:
        tm = (tm_cap // 256) * 256          # MXU-friendly on v6e/v7x
    else:
        tm = max(sub, (tm_cap // sub) * sub)
    m_pad = _round_up(M, tm)
    num_m = m_pad // tm

    # ---- grid ordering: re-fetch the smaller operand ----------------------
    sizes = {"m": num_m, "n": num_n, "k": num_k}
    x_bytes = M * in_dim * itemsize
    w_bytes = out_dim * in_dim * itemsize
    mn_order = ["m", "n"] if x_bytes >= w_bytes else ["n", "m"]
    order = [a for a in mn_order if sizes[a] > 1]
    if num_k > 1:
        order.append("k")                   # reduction axis innermost
    if not order:
        order = ["m"]

    pos = {a: i for i, a in enumerate(order)}

    def _idx(name, args):
        return args[pos[name]] if name in pos else 0

    x_map = lambda *args: (_idx("m", args), _idx("k", args))
    w_map = lambda *args: (_idx("k", args), _idx("n", args))
    o_map = lambda *args: (_idx("m", args), _idx("n", args))

    grid = tuple(sizes[a] for a in order)
    dim_sems = tuple("arbitrary" if a == "k" else "parallel" for a in order)

    if num_k > 1:
        kernel = _make_linear_kernel_kt(order.index("k"))
        scratch = [pltpu.VMEM((tm, tn), jnp.float32)]
    else:
        kernel = _linear_kernel
        scratch = []

    # ---- one-time wrapper-side weight cast + transpose (NN matmul) --------
    w_t = weight.astype(out_dtype).T            # [in_dim, out_dim]
    if (k_pad, n_pad) != (in_dim, out_dim):
        w_t = jnp.pad(w_t, ((0, k_pad - in_dim), (0, n_pad - out_dim)))
    if (m_pad, k_pad) != (M, in_dim):
        x2d = jnp.pad(x2d, ((0, m_pad - M), (0, k_pad - in_dim)))

    # ---- VMEM limit (always set; clamped to physical) ---------------------
    # NOTE: the weight block is conservatively counted double-buffered even
    # when its block index never changes across the inner loop.
    footprint = (2 * (tm * tk + tk * tn + tm * tn) * itemsize
                 + (tm * tn * 4 if num_k > 1 else 0))
    vmem_limit = min(max(int(footprint * 1.25) + (2 << 20), 32 << 20), limit_cap)

    # ---- honest cost estimate for the chosen grid -------------------------
    fx = _num_fetches(order, sizes, ("m", "k"))
    fw = _num_fetches(order, sizes, ("k", "n"))
    fo = _num_fetches(order, sizes, ("m", "n"))
    cost = pl.CostEstimate(
        flops=2 * m_pad * k_pad * n_pad,
        transcendentals=0,
        bytes_accessed=itemsize * (fx * tm * tk + fw * tk * tn + fo * tm * tn),
    )

    out2d = pl.pallas_call(
        kernel,
        out_shape=jax.ShapeDtypeStruct((m_pad, n_pad), out_dtype),
        grid_spec=pltpu.PrefetchScalarGridSpec(
            num_scalar_prefetch=0,
            grid=grid,
            in_specs=[
                pl.BlockSpec((tm, tk), x_map),   # activations
                pl.BlockSpec((tk, tn), w_map),   # pre-transposed weight slab
            ],
            out_specs=pl.BlockSpec((tm, tn), o_map),
            scratch_shapes=scratch,
        ),
        compiler_params=pltpu.CompilerParams(
            dimension_semantics=dim_sems,
            vmem_limit_bytes=vmem_limit,
        ),
        cost_estimate=cost,
    )(x2d, w_t)

    out2d = out2d[:M, :out_dim]
    return out2d.reshape(*lead_shape, out_dim)


if __name__ == "__main__":
    in_dim, out_dim = 32, 64
    batch, seq = 2, 8

    key = jax.random.PRNGKey(0)
    k_x, k_w = jax.random.split(key)

    # Deterministic PyTorch-style init: U(-1/sqrt(in_dim), 1/sqrt(in_dim)).
    bound = 1.0 / (in_dim ** 0.5)
    weight = jax.random.uniform(
        k_w, (out_dim, in_dim), dtype=jnp.float32, minval=-bound, maxval=bound
    )
    x = jax.random.normal(k_x, (batch, seq, in_dim), dtype=jnp.float32)

    out = continuous_embedding(x, weight)
    out = jax.block_until_ready(out)

    # Correctness check against plain JAX reference.
    ref = jnp.einsum("bsi,oi->bso", x, weight)
    assert out.shape == (batch, seq, out_dim)
    assert jnp.allclose(out, ref, atol=1e-5, rtol=1e-5)

    print("KERNEL_OK")
</pallas_src>

<mosaic_0001>
module attributes {stable_mosaic.version = 11 : i64} {
  func.func @_linear_kernel(%arg0: i32, %arg1: memref<16x32xf32, #tpu.memory_space<vmem>>, %arg2: memref<32x128xf32, #tpu.memory_space<vmem>>, %arg3: memref<16x128xf32, #tpu.memory_space<vmem>>) attributes {dimension_semantics = [#tpu.dimension_semantics<parallel>], iteration_bounds = array<i64: 1>, scalar_prefetch = 0 : i64, scratch_operands = 0 : i64, tpu.core_type = #tpu.core_type<tc>, window_params = [{transform_indices = @transform_0, window_bounds = array<i64: 16, 32>}, {pipeline_mode = #tpu.pipeline_mode<synchronous>, transform_indices = @transform_1, window_bounds = array<i64: 32, 128>}, {transform_indices = @transform_2, window_bounds = array<i64: 16, 128>}]} {
    %c0 = arith.constant 0 : index
    %c0_0 = arith.constant 0 : index
    %0 = vector.load %arg1[%c0, %c0_0] : memref<16x32xf32, #tpu.memory_space<vmem>>, vector<16x32xf32>
    %c0_1 = arith.constant 0 : index
    %c0_2 = arith.constant 0 : index
    %1 = vector.load %arg2[%c0_1, %c0_2] : memref<32x128xf32, #tpu.memory_space<vmem>>, vector<32x128xf32>
    %cst = arith.constant dense<0.000000e+00> : vector<16x128xf32>
    %2 = tpu.matmul %0, %1, %cst {dimension_numbers = #tpu.dot_dimension_numbers<[1], [0], [0], [1], [0, 0, 1, 1], [], []>} : vector<16x32xf32>, vector<32x128xf32>, vector<16x128xf32> -> vector<16x128xf32>
    %c0_3 = arith.constant 0 : index
    %c0_4 = arith.constant 0 : index
    %3 = vector.load %arg3[%c0_3, %c0_4] : memref<16x128xf32, #tpu.memory_space<vmem>>, vector<16x128xf32>
    tpu.vector_store %arg3[%c0_3, %c0_4], %2 {strides = array<i32>} : memref<16x128xf32, #tpu.memory_space<vmem>>, vector<16x128xf32>,
    return
  }
  func.func @transform_0(%arg0: i32) -> (i32, i32) {
    %c0_i32 = arith.constant 0 : i32
    %c0_i32_0 = arith.constant 0 : i32
    return %arg0, %c0_i32 : i32, i32
  }
  func.func @transform_1(%arg0: i32) -> (i32, i32) {
    %c0_i32 = arith.constant 0 : i32
    %c0_i32_0 = arith.constant 0 : i32
    %c0_i32_1 = arith.constant 0 : i32
    return %c0_i32, %c0_i32_0 : i32, i32
  }
  func.func @transform_2(%arg0: i32) -> (i32, i32) {
    %c0_i32 = arith.constant 0 : i32
    %c0_i32_0 = arith.constant 0 : i32
    return %arg0, %c0_i32 : i32, i32
  }
}

</mosaic_0001>

<bundles_post_ra>
// kernel: tpu_custom_call.1
= control target key start
LH: loop header
LB: loop body
LE: loop exit
PB: predicated region body
PF: predicated region fallthrough
CT: control target
= control target key end

     0   :  { %7 = vsyncpa [#allocation3], 0  ;;  %s278_s0 = inlined_call_operand.hbm [shape: f32[16,32], index: 0, kind: input, shape index: {}]   ;;  %s279_s1 = inlined_call_operand.hbm [shape: f32[32,128], index: 1, kind: input, shape index: {}]   ;;  %s280_s2 = inlined_call_operand.hbm [shape: f32[16,128], index: 2, kind: output, shape index: {}]  }
   0x1   :  { %8 = vsyncpa [#allocation6], 0 }
   0x2   :  { %9 = vsyncpa [#allocation4], 0  ;;  %s238_s9 = smov [#allocation2]  }
   0x3   :  { %s15_s10 = sshll.u32 %s238_s9, 4  ;;  %s16_s10 = int_to_ptr.vmem [resolvable:$true] %s15_s10 }
   0x4   :  { %s180_s11 = scalar_lea.vmem %s16_s10, 256  ;;  %p185_p1 = scmp.lt.s32.totalorder %s16_s10, %s16_s10 }
   0x5   :  { %p181_p0 = scmp.ne.s32.totalorder %s16_s10, %s180_s11  ;;  %p186_p2 = scmp.lt.s32.totalorder %s180_s11, %s180_s11 }
   0x7   :  { %p187_p3 = por %p186_p2, %p185_p1 }
   0x9   :  { %p188_p4 = pnand %p187_p3, %p181_p0 }
   0xb   :  { %191 = shalt.err (!%p188_p4)
}
   0xc   :  { %s239_s12 = smov 128   ;;  %s240_s13 = smov 8  }
   0xd   :  { %21 = dma.hbm_to_vmem [thread:$0]  %s278_s0, 256, %s16_s10, [#allocation3], %s239_s12, %s239_s12, %s240_s13  }
   0xe   :  { %s241_s16 = smov [#allocation5]  }
   0xf   :  { %s27_s17 = sshll.u32 %s241_s16, 4  ;;  %s28_s17 = int_to_ptr.vmem [resolvable:$true] %s27_s17 }
  0x10   :  { %s200_s18 = scalar_lea.vmem %s28_s17, 512  ;;  %p205_p6 = scmp.lt.s32.totalorder %s28_s17, %s28_s17 }
  0x11   :  { %p201_p5 = scmp.ne.s32.totalorder %s28_s17, %s200_s18  ;;  %p206_p7 = scmp.lt.s32.totalorder %s200_s18, %s200_s18 }
  0x13   :  { %p207_p8 = por %p206_p7, %p205_p6 }
  0x15   :  { %p208_p9 = pnand %p207_p8, %p201_p5 }
  0x17   :  { %211 = shalt.err (!%p208_p9)
}
  0x18   :  { %33 = dma.hbm_to_vmem [thread:$0]  %s279_s1, 512, %s28_s17, [#allocation6], %s239_s12, %s239_s12, %s240_s13  }
  0x19   :  { %232 = dma.done.wait [#allocation3], 256  }
  0x1a   :  { %233 = vsyncadd [#allocation3], 4294967040 }
  0x1b   :  { %234 = dma.done.wait [#allocation6], 512  }
  0x1c   :  { %235 = vsyncadd [#allocation6], 4294966784  ;;  %vm46_vm0 = vcmask 261120   ;;  %v45_v0 = vld [vmem:[#allocation5 + $0x18] sm:$0xff]  ;;  %v44_v1 = vld [vmem:[#allocation5 + $0x10] sm:$0xff]  ;;  %s242_s0 = smov [#allocation7]  }
  0x1d   :  { %156 = vmatprep.subr.mxu0 %v45_v0  ;;  %v40_v2 = vld [vmem:[#allocation2] sm:$0xff]  ;;  %v43_v3 = vld [vmem:[#allocation5 + $0x8] sm:$0xff]  ;;  %v42_v4 = vld [vmem:[#allocation5] sm:$0xff]  ;;  %s135_s1 = sshll.u32 %s242_s0, 4  ;;  %s136_s1 = int_to_ptr.vmem [resolvable:$true] %s135_s1 }
  0x1e   :  { %157 = vmatpush3.msra.mxu0 %v45_v0  ;;  %164 = vmatprep.mubr.msk.f32.mxu0 %vm46_vm0, %v40_v2  ;;  %v41_v5 = vld [vmem:[#allocation2 + $0x8] sm:$0xff]  ;;  %s212_s21 = scalar_lea.vmem %s136_s1, 256  ;;  %p217_p11 = scmp.lt.s32.totalorder %s136_s1, %s136_s1 }
  0x1f   :  { %158 = vmatprep.subr.mxu0 %v44_v1  ;;  %p213_p10 = scmp.ne.s32.totalorder %s136_s1, %s212_s21  ;;  %p218_p12 = scmp.lt.s32.totalorder %s212_s21, %s212_s21 }
  0x20   :  { %159 = vmatpush3.msra.mxu0 %v44_v1 }
  0x21   :  { %160 = vmatprep.subr.mxu0 %v43_v3  ;;  %p219_p13 = por %p218_p12, %p217_p11 }
  0x22   :  { %161 = vmatpush3.msra.mxu0 %v43_v3 }
  0x23   :  { %162 = vmatprep.subr.mxu0 %v42_v4  ;;  %p220_p0 = pnand %p219_p13, %p213_p10 }
  0x24   :  { %163 = vmatpush3.msra.mxu0 %v42_v4 }
  0x25   :  { %165 = vmatmul.mubr.msk.f32.vlgmr.msra.gmra.mxu0 %vm46_vm0, %v41_v5 }
  0xe5   :  { %v166_v6 = vpop.f32.mrf.mxu0 }
  0xe6   :  { %129 = vst [vmem:[#allocation7 + $0x8] sm:$0xff] %v166_v6 }
  0xe7   :  { %v119_v7 = vpop.f32.mrf.mxu0 }
  0xe8   :  { %128 = vst [vmem:[#allocation7] sm:$0xff] %v119_v7 }
  0xe9   :  { %223 = shalt.err (!%p220_p0)
}
  0xea   :  { %141 = dma.vmem_to_hbm [thread:$0]  %s136_s1, 256, %s280_s2, [#allocation4], %s239_s12, %s239_s12, %s240_s13  }
  0xeb   :  { %236 = dma.done.wait [#allocation4], 256  }
  0xec   :  { %237 = vsyncadd [#allocation4], 4294967040 }
  0xed   :  { %145 = vsyncpa [#allocation3], 1 }
  0xee   :  { %146 = vsyncpa [#allocation6], 1 }
  0xef   :  { %147 = vsyncpa [#allocation4], 1 }

</bundles_post_ra>
